<compile_context>
chip_gen: v7x
topology: tpu7x:2x2x1
jax: 0.10.0
libtpu: 0.0.40
codegen_flags: <defaults>
</compile_context>

<pallas_src>
import functools

import jax
import jax.numpy as jnp
from jax import lax
from jax.experimental import pallas as pl
from jax.experimental.pallas import tpu as pltpu


def _make_gru_kernel(seq_len, chunk, hidden_dim, unroll):
    """Builds the streaming GRU-recurrence kernel (static shapes closed over)."""
    H = hidden_dim
    needs_mask = (seq_len % chunk) != 0

    def kernel(gi_ref, h0_ref, whh_ref, bhn_ref, out_ref, h_scr):
        c = pl.program_id(0)

        @pl.when(c == 0)
        def _init():
            h_scr[...] = h0_ref[...].astype(jnp.float32)

        # Loop-invariant packed recurrent weight (H, 3H) and n-gate hidden bias.
        whh = whh_ref[...].astype(jnp.float32)          # (H, 3H), lanes r|z|n
        b_hn = bhn_ref[...].astype(jnp.float32)         # (1, H)
        base = c * chunk

        def step(i, h):
            # Packed, bias-folded input projection for this timestep: (B, 3H).
            gi = gi_ref[i].astype(jnp.float32)
            # Single MXU push per step: h @ W_hh_packed -> (B, 3H).
            gh = jnp.dot(h, whh, preferred_element_type=jnp.float32)
            # One fused sigmoid over the concatenated [r|z] lanes, slice after.
            rz = jax.nn.sigmoid(gi[:, :2 * H] + gh[:, :2 * H])
            r = rz[:, :H]
            z = rz[:, H:]
            n = jnp.tanh(gi[:, 2 * H:] + r * (gh[:, 2 * H:] + b_hn))
            h_new = (1.0 - z) * n + z * h
            if needs_mask:
                # Padded timesteps (beyond the true sequence) carry h through.
                h_new = jnp.where(base + i < seq_len, h_new, h)
            return h_new

        h = lax.fori_loop(0, chunk, step, h_scr[...], unroll=unroll)
        h_scr[...] = h

        @pl.when(c == pl.num_programs(0) - 1)
        def _finalize():
            out_ref[...] = h.astype(out_ref.dtype)

    return kernel


@functools.partial(jax.jit, static_argnames=("chunk",))
def intend_forward(feat, hidden, w_ih, w_hh, b_ih, b_hh, chunk=64):
    """feat: (S, B, Din), hidden: (1, B, H). Returns (B, H) = final GRU hidden."""
    S, B, Din = feat.shape
    H = hidden.shape[-1]
    out_dtype = feat.dtype

    chunk = max(1, min(chunk, S))
    num_chunks = pl.cdiv(S, chunk)
    S_pad = num_chunks * chunk

    # ---- Fold biases (f32). b_ih into every gate, b_hh into r/z; the n-gate
    # hidden bias must stay inside r * (h @ W_hn + b_hn). --------------------
    b_ih32 = b_ih.astype(jnp.float32)
    b_hh32 = b_hh.astype(jnp.float32)
    b_gates = jnp.concatenate(
        [b_ih32[:2 * H] + b_hh32[:2 * H], b_ih32[2 * H:]])        # (3H,)
    b_hn = b_hh32[2 * H:].reshape(1, H)                           # (1, H)

    # ---- Hoisted input projection: one big MXU matmul (XLA side), no
    # materialized W_ih^T (dot_general contracts on Din). --------------------
    gi = lax.dot_general(
        feat.reshape(S * B, Din), w_ih,
        dimension_numbers=(((1,), (1,)), ((), ())),
        preferred_element_type=jnp.float32)                       # (S*B, 3H)
    gi = (gi + b_gates).reshape(S, B, 3 * H).astype(feat.dtype)   # packed r|z|n
    if S_pad != S:
        gi = jnp.pad(gi, ((0, S_pad - S), (0, 0), (0, 0)))

    # Packed recurrent weight (H, 3H), lane order r|z|n (tiny one-time relayout).
    whh = jnp.transpose(w_hh)                                     # (H, 3H)
    h0 = hidden[0]                                                # (B, H)

    unroll = int(min(chunk, 8))
    kernel = _make_gru_kernel(S, chunk, H, unroll)

    # ---- VMEM budget (explicit, with headroom; respects v7x's smaller VMEM).
    def _pad_up(n, m):
        return -(-n // m) * m

    itemsize = jnp.dtype(feat.dtype).itemsize
    gi_block_bytes = chunk * _pad_up(B, 8) * _pad_up(3 * H, 128) * itemsize
    resident_bytes = 4 * (2 * _pad_up(B, 8) * _pad_up(H, 128)      # h0 + out
                          + _pad_up(H, 8) * _pad_up(3 * H, 128)    # whh
                          + 8 * _pad_up(H, 128)                    # b_hn
                          + _pad_up(B, 8) * _pad_up(H, 128))       # scratch h
    vmem_bytes = int(min(30 * 1024 * 1024,
                         max(4 * 1024 * 1024,
                             4 * gi_block_bytes + 2 * resident_bytes)))

    cost = pl.CostEstimate(
        flops=6 * S * B * H * H,                 # one (B,H)@(H,3H) per step
        transcendentals=3 * S * B * H,           # sigmoid (2H) + tanh (H) / step
        bytes_accessed=int(gi.size * itemsize
                           + (2 * B * H + H * 3 * H + H) * 4),
    )

    out = pl.pallas_call(
        kernel,
        out_shape=jax.ShapeDtypeStruct((B, H), out_dtype),
        grid_spec=pltpu.PrefetchScalarGridSpec(
            num_scalar_prefetch=0,
            grid=(num_chunks,),
            in_specs=[
                pl.BlockSpec((chunk, B, 3 * H), lambda c: (c, 0, 0)),  # gi slab
                pl.BlockSpec((B, H), lambda c: (0, 0)),                # h0
                pl.BlockSpec((H, 3 * H), lambda c: (0, 0)),            # whh
                pl.BlockSpec((1, H), lambda c: (0, 0)),                # b_hn
            ],
            out_specs=pl.BlockSpec((B, H), lambda c: (0, 0)),
            scratch_shapes=[pltpu.VMEM((B, H), jnp.float32)],          # carried h
        ),
        compiler_params=pltpu.CompilerParams(
            dimension_semantics=("arbitrary",),      # serial recurrence over S
            vmem_limit_bytes=vmem_bytes,
        ),
        cost_estimate=cost,
    )(gi, h0, whh, b_hn)
    return out


def gru_reference(feat, hidden, w_ih, w_hh, b_ih, b_hh):
    """Pure-JAX reference matching torch.nn.GRU semantics (gate order r, z, n)."""
    H = hidden.shape[-1]

    def step(h, x):
        gi = x @ w_ih.T + b_ih
        gh = h @ w_hh.T + b_hh
        i_r, i_z, i_n = gi[:, :H], gi[:, H:2 * H], gi[:, 2 * H:]
        h_r, h_z, h_n = gh[:, :H], gh[:, H:2 * H], gh[:, 2 * H:]
        r = jax.nn.sigmoid(i_r + h_r)
        z = jax.nn.sigmoid(i_z + h_z)
        n = jnp.tanh(i_n + r * h_n)
        h_new = (1.0 - z) * n + z * h
        return h_new, None

    h_final, _ = lax.scan(step, hidden[0], feat)
    return h_final


if __name__ == "__main__":
    # Shapes consistent with the module: GRU(input_dim, output_dim),
    # feat (seq_len, batch, input_dim), hidden (1, batch, output_dim).
    seq_len, batch, input_dim, output_dim = 8, 8, 32, 32

    key = jax.random.PRNGKey(0)
    k_feat, k_h, k_wih, k_whh, k_bih, k_bhh = jax.random.split(key, 6)

    feat = jax.random.normal(k_feat, (seq_len, batch, input_dim), jnp.float32)
    hidden = jax.random.normal(k_h, (1, batch, output_dim), jnp.float32)

    # Deterministic parameter init, PyTorch-style U(-1/sqrt(H), 1/sqrt(H)).
    bound = 1.0 / (output_dim ** 0.5)
    w_ih = jax.random.uniform(k_wih, (3 * output_dim, input_dim), jnp.float32,
                              -bound, bound)
    w_hh = jax.random.uniform(k_whh, (3 * output_dim, output_dim), jnp.float32,
                              -bound, bound)
    b_ih = jax.random.uniform(k_bih, (3 * output_dim,), jnp.float32, -bound, bound)
    b_hh = jax.random.uniform(k_bhh, (3 * output_dim,), jnp.float32, -bound, bound)

    out = intend_forward(feat, hidden, w_ih, w_hh, b_ih, b_hh)
    out = jax.block_until_ready(out)

    ref = gru_reference(feat, hidden, w_ih, w_hh, b_ih, b_hh)
    assert out.shape == (batch, output_dim), out.shape
    assert jnp.allclose(out, ref, atol=1e-4, rtol=1e-4), \
        float(jnp.max(jnp.abs(out - ref)))

    # TODO(synk): batch_norm / dropout / activation members of Intend are not
    # used by forward(), so they are intentionally not implemented.
    print("KERNEL_OK")
</pallas_src>

<mosaic_0001>
module attributes {stable_mosaic.version = 11 : i64} {
  func.func @kernel(%arg0: i32, %arg1: memref<8x8x96xf32, #tpu.memory_space<vmem>>, %arg2: memref<8x32xf32, #tpu.memory_space<vmem>>, %arg3: memref<32x96xf32, #tpu.memory_space<vmem>>, %arg4: memref<1x32xf32, #tpu.memory_space<vmem>>, %arg5: memref<8x32xf32, #tpu.memory_space<vmem>>, %arg6: memref<8x32xf32, #tpu.memory_space<vmem>>) attributes {dimension_semantics = [#tpu.dimension_semantics<arbitrary>], iteration_bounds = array<i64: 1>, scalar_prefetch = 0 : i64, scratch_operands = 1 : i64, tpu.core_type = #tpu.core_type<tc>, window_params = [{transform_indices = @transform_0, window_bounds = array<i64: 8, 8, 96>}, {pipeline_mode = #tpu.pipeline_mode<synchronous>, transform_indices = @transform_1, window_bounds = array<i64: 8, 32>}, {pipeline_mode = #tpu.pipeline_mode<synchronous>, transform_indices = @transform_2, window_bounds = array<i64: 32, 96>}, {pipeline_mode = #tpu.pipeline_mode<synchronous>, transform_indices = @transform_3, window_bounds = array<i64: 1, 32>}, {pipeline_mode = #tpu.pipeline_mode<synchronous>, transform_indices = @transform_4, window_bounds = array<i64: 8, 32>}]} {
    %c0_i32 = arith.constant 0 : i32
    %0 = arith.cmpi eq, %arg0, %c0_i32 : i32
    %1 = arith.extui %0 : i1 to i32
    %c0_i32_0 = arith.constant 0 : i32
    %2 = arith.cmpi ne, %1, %c0_i32_0 : i32
    scf.if %2 {
      %c0_50 = arith.constant 0 : index
      %c0_51 = arith.constant 0 : index
      %218 = vector.load %arg2[%c0_50, %c0_51] : memref<8x32xf32, #tpu.memory_space<vmem>>, vector<8x32xf32>
      %c0_52 = arith.constant 0 : index
      %c0_53 = arith.constant 0 : index
      %219 = vector.load %arg6[%c0_52, %c0_53] : memref<8x32xf32, #tpu.memory_space<vmem>>, vector<8x32xf32>
      tpu.vector_store %arg6[%c0_52, %c0_53], %218 {strides = array<i32>} : memref<8x32xf32, #tpu.memory_space<vmem>>, vector<8x32xf32>,
    } else {
    }
    %c0 = arith.constant 0 : index
    %c0_1 = arith.constant 0 : index
    %3 = vector.load %arg3[%c0, %c0_1] : memref<32x96xf32, #tpu.memory_space<vmem>>, vector<32x96xf32>
    %c0_2 = arith.constant 0 : index
    %c0_3 = arith.constant 0 : index
    %4 = vector.load %arg4[%c0_2, %c0_3] : memref<1x32xf32, #tpu.memory_space<vmem>>, vector<1x32xf32>
    %c0_4 = arith.constant 0 : index
    %c0_5 = arith.constant 0 : index
    %5 = vector.load %arg6[%c0_4, %c0_5] : memref<8x32xf32, #tpu.memory_space<vmem>>, vector<8x32xf32>
    %c0_i32_6 = arith.constant 0 : i32
    %6 = arith.index_cast %c0_i32_6 : i32 to index
    %c0_7 = arith.constant 0 : index
    %c0_8 = arith.constant 0 : index
    %7 = vector.load %arg1[%6, %c0_7, %c0_8] : memref<8x8x96xf32, #tpu.memory_space<vmem>>, vector<1x8x96xf32>
    %8 = vector.shape_cast %7 : vector<1x8x96xf32> to vector<8x96xf32>
    %cst = arith.constant dense<0.000000e+00> : vector<8x96xf32>
    %9 = tpu.matmul %5, %3, %cst {dimension_numbers = #tpu.dot_dimension_numbers<[1], [0], [0], [1], [0, 0, 1, 1], [], []>} : vector<8x32xf32>, vector<32x96xf32>, vector<8x96xf32> -> vector<8x96xf32>
    %10 = vector.extract_strided_slice %8 {offsets = [0, 0], sizes = [8, 64], strides = [1, 1]} : vector<8x96xf32> to vector<8x64xf32>
    %11 = vector.extract_strided_slice %9 {offsets = [0, 0], sizes = [8, 64], strides = [1, 1]} : vector<8x96xf32> to vector<8x64xf32>
    %12 = arith.addf %10, %11 : vector<8x64xf32>
    %13 = arith.negf %12 : vector<8x64xf32>
    %14 = math.exp %13 : vector<8x64xf32>
    %cst_9 = arith.constant 1.000000e+00 : f32
    %15 = vector.broadcast %cst_9 : f32 to vector<8x64xf32>
    %16 = arith.addf %15, %14 : vector<8x64xf32>
    %17 = arith.divf %15, %16 : vector<8x64xf32>
    %18 = vector.extract_strided_slice %17 {offsets = [0, 0], sizes = [8, 32], strides = [1, 1]} : vector<8x64xf32> to vector<8x32xf32>
    %19 = vector.extract_strided_slice %17 {offsets = [0, 32], sizes = [8, 32], strides = [1, 1]} : vector<8x64xf32> to vector<8x32xf32>
    %20 = vector.extract_strided_slice %8 {offsets = [0, 64], sizes = [8, 32], strides = [1, 1]} : vector<8x96xf32> to vector<8x32xf32>
    %21 = vector.extract_strided_slice %9 {offsets = [0, 64], sizes = [8, 32], strides = [1, 1]} : vector<8x96xf32> to vector<8x32xf32>
    %22 = vector.broadcast %4 : vector<1x32xf32> to vector<8x32xf32>
    %23 = arith.addf %21, %22 : vector<8x32xf32>
    %24 = arith.mulf %18, %23 : vector<8x32xf32>
    %25 = arith.addf %20, %24 : vector<8x32xf32>
    %26 = math.tanh %25 : vector<8x32xf32>
    %cst_10 = arith.constant 1.000000e+00 : f32
    %27 = vector.broadcast %cst_10 : f32 to vector<8x32xf32>
    %28 = arith.subf %27, %19 : vector<8x32xf32>
    %29 = arith.mulf %28, %26 : vector<8x32xf32>
    %30 = arith.mulf %19, %5 : vector<8x32xf32>
    %31 = arith.addf %29, %30 : vector<8x32xf32>
    %c1_i32 = arith.constant 1 : i32
    %32 = arith.index_cast %c1_i32 : i32 to index
    %c0_11 = arith.constant 0 : index
    %c0_12 = arith.constant 0 : index
    %33 = vector.load %arg1[%32, %c0_11, %c0_12] : memref<8x8x96xf32, #tpu.memory_space<vmem>>, vector<1x8x96xf32>
    %34 = vector.shape_cast %33 : vector<1x8x96xf32> to vector<8x96xf32>
    %cst_13 = arith.constant dense<0.000000e+00> : vector<8x96xf32>
    %35 = tpu.matmul %31, %3, %cst_13 {dimension_numbers = #tpu.dot_dimension_numbers<[1], [0], [0], [1], [0, 0, 1, 1], [], []>} : vector<8x32xf32>, vector<32x96xf32>, vector<8x96xf32> -> vector<8x96xf32>
    %36 = vector.extract_strided_slice %34 {offsets = [0, 0], sizes = [8, 64], strides = [1, 1]} : vector<8x96xf32> to vector<8x64xf32>
    %37 = vector.extract_strided_slice %35 {offsets = [0, 0], sizes = [8, 64], strides = [1, 1]} : vector<8x96xf32> to vector<8x64xf32>
    %38 = arith.addf %36, %37 : vector<8x64xf32>
    %39 = arith.negf %38 : vector<8x64xf32>
    %40 = math.exp %39 : vector<8x64xf32>
    %cst_14 = arith.constant 1.000000e+00 : f32
    %41 = vector.broadcast %cst_14 : f32 to vector<8x64xf32>
    %42 = arith.addf %41, %40 : vector<8x64xf32>
    %43 = arith.divf %41, %42 : vector<8x64xf32>
    %44 = vector.extract_strided_slice %43 {offsets = [0, 0], sizes = [8, 32], strides = [1, 1]} : vector<8x64xf32> to vector<8x32xf32>
    %45 = vector.extract_strided_slice %43 {offsets = [0, 32], sizes = [8, 32], strides = [1, 1]} : vector<8x64xf32> to vector<8x32xf32>
    %46 = vector.extract_strided_slice %34 {offsets = [0, 64], sizes = [8, 32], strides = [1, 1]} : vector<8x96xf32> to vector<8x32xf32>
    %47 = vector.extract_strided_slice %35 {offsets = [0, 64], sizes = [8, 32], strides = [1, 1]} : vector<8x96xf32> to vector<8x32xf32>
    %48 = vector.broadcast %4 : vector<1x32xf32> to vector<8x32xf32>
    %49 = arith.addf %47, %48 : vector<8x32xf32>
    %50 = arith.mulf %44, %49 : vector<8x32xf32>
    %51 = arith.addf %46, %50 : vector<8x32xf32>
    %52 = math.tanh %51 : vector<8x32xf32>
    %cst_15 = arith.constant 1.000000e+00 : f32
    %53 = vector.broadcast %cst_15 : f32 to vector<8x32xf32>
    %54 = arith.subf %53, %45 : vector<8x32xf32>
    %55 = arith.mulf %54, %52 : vector<8x32xf32>
    %56 = arith.mulf %45, %31 : vector<8x32xf32>
    %57 = arith.addf %55, %56 : vector<8x32xf32>
    %c2_i32 = arith.constant 2 : i32
    %58 = arith.index_cast %c2_i32 : i32 to index
    %c0_16 = arith.constant 0 : index
    %c0_17 = arith.constant 0 : index
    %59 = vector.load %arg1[%58, %c0_16, %c0_17] : memref<8x8x96xf32, #tpu.memory_space<vmem>>, vector<1x8x96xf32>
    %60 = vector.shape_cast %59 : vector<1x8x96xf32> to vector<8x96xf32>
    %cst_18 = arith.constant dense<0.000000e+00> : vector<8x96xf32>
    %61 = tpu.matmul %57, %3, %cst_18 {dimension_numbers = #tpu.dot_dimension_numbers<[1], [0], [0], [1], [0, 0, 1, 1], [], []>} : vector<8x32xf32>, vector<32x96xf32>, vector<8x96xf32> -> vector<8x96xf32>
    %62 = vector.extract_strided_slice %60 {offsets = [0, 0], sizes = [8, 64], strides = [1, 1]} : vector<8x96xf32> to vector<8x64xf32>
    %63 = vector.extract_strided_slice %61 {offsets = [0, 0], sizes = [8, 64], strides = [1, 1]} : vector<8x96xf32> to vector<8x64xf32>
    %64 = arith.addf %62, %63 : vector<8x64xf32>
    %65 = arith.negf %64 : vector<8x64xf32>
    %66 = math.exp %65 : vector<8x64xf32>
    %cst_19 = arith.constant 1.000000e+00 : f32
    %67 = vector.broadcast %cst_19 : f32 to vector<8x64xf32>
    %68 = arith.addf %67, %66 : vector<8x64xf32>
    %69 = arith.divf %67, %68 : vector<8x64xf32>
    %70 = vector.extract_strided_slice %69 {offsets = [0, 0], sizes = [8, 32], strides = [1, 1]} : vector<8x64xf32> to vector<8x32xf32>
    %71 = vector.extract_strided_slice %69 {offsets = [0, 32], sizes = [8, 32], strides = [1, 1]} : vector<8x64xf32> to vector<8x32xf32>
    %72 = vector.extract_strided_slice %60 {offsets = [0, 64], sizes = [8, 32], strides = [1, 1]} : vector<8x96xf32> to vector<8x32xf32>
    %73 = vector.extract_strided_slice %61 {offsets = [0, 64], sizes = [8, 32], strides = [1, 1]} : vector<8x96xf32> to vector<8x32xf32>
    %74 = vector.broadcast %4 : vector<1x32xf32> to vector<8x32xf32>
    %75 = arith.addf %73, %74 : vector<8x32xf32>
    %76 = arith.mulf %70, %75 : vector<8x32xf32>
    %77 = arith.addf %72, %76 : vector<8x32xf32>
    %78 = math.tanh %77 : vector<8x32xf32>
    %cst_20 = arith.constant 1.000000e+00 : f32
    %79 = vector.broadcast %cst_20 : f32 to vector<8x32xf32>
    %80 = arith.subf %79, %71 : vector<8x32xf32>
    %81 = arith.mulf %80, %78 : vector<8x32xf32>
    %82 = arith.mulf %71, %57 : vector<8x32xf32>
    %83 = arith.addf %81, %82 : vector<8x32xf32>
    %c3_i32 = arith.constant 3 : i32
    %84 = arith.index_cast %c3_i32 : i32 to index
    %c0_21 = arith.constant 0 : index
    %c0_22 = arith.constant 0 : index
    %85 = vector.load %arg1[%84, %c0_21, %c0_22] : memref<8x8x96xf32, #tpu.memory_space<vmem>>, vector<1x8x96xf32>
    %86 = vector.shape_cast %85 : vector<1x8x96xf32> to vector<8x96xf32>
    %cst_23 = arith.constant dense<0.000000e+00> : vector<8x96xf32>
    %87 = tpu.matmul %83, %3, %cst_23 {dimension_numbers = #tpu.dot_dimension_numbers<[1], [0], [0], [1], [0, 0, 1, 1], [], []>} : vector<8x32xf32>, vector<32x96xf32>, vector<8x96xf32> -> vector<8x96xf32>
    %88 = vector.extract_strided_slice %86 {offsets = [0, 0], sizes = [8, 64], strides = [1, 1]} : vector<8x96xf32> to vector<8x64xf32>
    %89 = vector.extract_strided_slice %87 {offsets = [0, 0], sizes = [8, 64], strides = [1, 1]} : vector<8x96xf32> to vector<8x64xf32>
    %90 = arith.addf %88, %89 : vector<8x64xf32>
    %91 = arith.negf %90 : vector<8x64xf32>
    %92 = math.exp %91 : vector<8x64xf32>
    %cst_24 = arith.constant 1.000000e+00 : f32
    %93 = vector.broadcast %cst_24 : f32 to vector<8x64xf32>
    %94 = arith.addf %93, %92 : vector<8x64xf32>
    %95 = arith.divf %93, %94 : vector<8x64xf32>
    %96 = vector.extract_strided_slice %95 {offsets = [0, 0], sizes = [8, 32], strides = [1, 1]} : vector<8x64xf32> to vector<8x32xf32>
    %97 = vector.extract_strided_slice %95 {offsets = [0, 32], sizes = [8, 32], strides = [1, 1]} : vector<8x64xf32> to vector<8x32xf32>
    %98 = vector.extract_strided_slice %86 {offsets = [0, 64], sizes = [8, 32], strides = [1, 1]} : vector<8x96xf32> to vector<8x32xf32>
    %99 = vector.extract_strided_slice %87 {offsets = [0, 64], sizes = [8, 32], strides = [1, 1]} : vector<8x96xf32> to vector<8x32xf32>
    %100 = vector.broadcast %4 : vector<1x32xf32> to vector<8x32xf32>
    %101 = arith.addf %99, %100 : vector<8x32xf32>
    %102 = arith.mulf %96, %101 : vector<8x32xf32>
    %103 = arith.addf %98, %102 : vector<8x32xf32>
    %104 = math.tanh %103 : vector<8x32xf32>
    %cst_25 = arith.constant 1.000000e+00 : f32
    %105 = vector.broadcast %cst_25 : f32 to vector<8x32xf32>
    %106 = arith.subf %105, %97 : vector<8x32xf32>
    %107 = arith.mulf %106, %104 : vector<8x32xf32>
    %108 = arith.mulf %97, %83 : vector<8x32xf32>
    %109 = arith.addf %107, %108 : vector<8x32xf32>
    %c4_i32 = arith.constant 4 : i32
    %110 = arith.index_cast %c4_i32 : i32 to index
    %c0_26 = arith.constant 0 : index
    %c0_27 = arith.constant 0 : index
    %111 = vector.load %arg1[%110, %c0_26, %c0_27] : memref<8x8x96xf32, #tpu.memory_space<vmem>>, vector<1x8x96xf32>
    %112 = vector.shape_cast %111 : vector<1x8x96xf32> to vector<8x96xf32>
    %cst_28 = arith.constant dense<0.000000e+00> : vector<8x96xf32>
    %113 = tpu.matmul %109, %3, %cst_28 {dimension_numbers = #tpu.dot_dimension_numbers<[1], [0], [0], [1], [0, 0, 1, 1], [], []>} : vector<8x32xf32>, vector<32x96xf32>, vector<8x96xf32> -> vector<8x96xf32>
    %114 = vector.extract_strided_slice %112 {offsets = [0, 0], sizes = [8, 64], strides = [1, 1]} : vector<8x96xf32> to vector<8x64xf32>
    %115 = vector.extract_strided_slice %113 {offsets = [0, 0], sizes = [8, 64], strides = [1, 1]} : vector<8x96xf32> to vector<8x64xf32>
    %116 = arith.addf %114, %115 : vector<8x64xf32>
    %117 = arith.negf %116 : vector<8x64xf32>
    %118 = math.exp %117 : vector<8x64xf32>
    %cst_29 = arith.constant 1.000000e+00 : f32
    %119 = vector.broadcast %cst_29 : f32 to vector<8x64xf32>
    %120 = arith.addf %119, %118 : vector<8x64xf32>
    %121 = arith.divf %119, %120 : vector<8x64xf32>
    %122 = vector.extract_strided_slice %121 {offsets = [0, 0], sizes = [8, 32], strides = [1, 1]} : vector<8x64xf32> to vector<8x32xf32>
    %123 = vector.extract_strided_slice %121 {offsets = [0, 32], sizes = [8, 32], strides = [1, 1]} : vector<8x64xf32> to vector<8x32xf32>
    %124 = vector.extract_strided_slice %112 {offsets = [0, 64], sizes = [8, 32], strides = [1, 1]} : vector<8x96xf32> to vector<8x32xf32>
    %125 = vector.extract_strided_slice %113 {offsets = [0, 64], sizes = [8, 32], strides = [1, 1]} : vector<8x96xf32> to vector<8x32xf32>
    %126 = vector.broadcast %4 : vector<1x32xf32> to vector<8x32xf32>
    %127 = arith.addf %125, %126 : vector<8x32xf32>
    %128 = arith.mulf %122, %127 : vector<8x32xf32>
    %129 = arith.addf %124, %128 : vector<8x32xf32>
    %130 = math.tanh %129 : vector<8x32xf32>
    %cst_30 = arith.constant 1.000000e+00 : f32
    %131 = vector.broadcast %cst_30 : f32 to vector<8x32xf32>
    %132 = arith.subf %131, %123 : vector<8x32xf32>
    %133 = arith.mulf %132, %130 : vector<8x32xf32>
    %134 = arith.mulf %123, %109 : vector<8x32xf32>
    %135 = arith.addf %133, %134 : vector<8x32xf32>
    %c5_i32 = arith.constant 5 : i32
    %136 = arith.index_cast %c5_i32 : i32 to index
    %c0_31 = arith.constant 0 : index
    %c0_32 = arith.constant 0 : index
    %137 = vector.load %arg1[%136, %c0_31, %c0_32] : memref<8x8x96xf32, #tpu.memory_space<vmem>>, vector<1x8x96xf32>
    %138 = vector.shape_cast %137 : vector<1x8x96xf32> to vector<8x96xf32>
    %cst_33 = arith.constant dense<0.000000e+00> : vector<8x96xf32>
    %139 = tpu.matmul %135, %3, %cst_33 {dimension_numbers = #tpu.dot_dimension_numbers<[1], [0], [0], [1], [0, 0, 1, 1], [], []>} : vector<8x32xf32>, vector<32x96xf32>, vector<8x96xf32> -> vector<8x96xf32>
    %140 = vector.extract_strided_slice %138 {offsets = [0, 0], sizes = [8, 64], strides = [1, 1]} : vector<8x96xf32> to vector<8x64xf32>
    %141 = vector.extract_strided_slice %139 {offsets = [0, 0], sizes = [8, 64], strides = [1, 1]} : vector<8x96xf32> to vector<8x64xf32>
    %142 = arith.addf %140, %141 : vector<8x64xf32>
    %143 = arith.negf %142 : vector<8x64xf32>
    %144 = math.exp %143 : vector<8x64xf32>
    %cst_34 = arith.constant 1.000000e+00 : f32
    %145 = vector.broadcast %cst_34 : f32 to vector<8x64xf32>
    %146 = arith.addf %145, %144 : vector<8x64xf32>
    %147 = arith.divf %145, %146 : vector<8x64xf32>
    %148 = vector.extract_strided_slice %147 {offsets = [0, 0], sizes = [8, 32], strides = [1, 1]} : vector<8x64xf32> to vector<8x32xf32>
    %149 = vector.extract_strided_slice %147 {offsets = [0, 32], sizes = [8, 32], strides = [1, 1]} : vector<8x64xf32> to vector<8x32xf32>
    %150 = vector.extract_strided_slice %138 {offsets = [0, 64], sizes = [8, 32], strides = [1, 1]} : vector<8x96xf32> to vector<8x32xf32>
    %151 = vector.extract_strided_slice %139 {offsets = [0, 64], sizes = [8, 32], strides = [1, 1]} : vector<8x96xf32> to vector<8x32xf32>
    %152 = vector.broadcast %4 : vector<1x32xf32> to vector<8x32xf32>
    %153 = arith.addf %151, %152 : vector<8x32xf32>
    %154 = arith.mulf %148, %153 : vector<8x32xf32>
    %155 = arith.addf %150, %154 : vector<8x32xf32>
    %156 = math.tanh %155 : vector<8x32xf32>
    %cst_35 = arith.constant 1.000000e+00 : f32
    %157 = vector.broadcast %cst_35 : f32 to vector<8x32xf32>
    %158 = arith.subf %157, %149 : vector<8x32xf32>
    %159 = arith.mulf %158, %156 : vector<8x32xf32>
    %160 = arith.mulf %149, %135 : vector<8x32xf32>
    %161 = arith.addf %159, %160 : vector<8x32xf32>
    %c6_i32 = arith.constant 6 : i32
    %162 = arith.index_cast %c6_i32 : i32 to index
    %c0_36 = arith.constant 0 : index
    %c0_37 = arith.constant 0 : index
    %163 = vector.load %arg1[%162, %c0_36, %c0_37] : memref<8x8x96xf32, #tpu.memory_space<vmem>>, vector<1x8x96xf32>
    %164 = vector.shape_cast %163 : vector<1x8x96xf32> to vector<8x96xf32>
    %cst_38 = arith.constant dense<0.000000e+00> : vector<8x96xf32>
    %165 = tpu.matmul %161, %3, %cst_38 {dimension_numbers = #tpu.dot_dimension_numbers<[1], [0], [0], [1], [0, 0, 1, 1], [], []>} : vector<8x32xf32>, vector<32x96xf32>, vector<8x96xf32> -> vector<8x96xf32>
    %166 = vector.extract_strided_slice %164 {offsets = [0, 0], sizes = [8, 64], strides = [1, 1]} : vector<8x96xf32> to vector<8x64xf32>
    %167 = vector.extract_strided_slice %165 {offsets = [0, 0], sizes = [8, 64], strides = [1, 1]} : vector<8x96xf32> to vector<8x64xf32>
    %168 = arith.addf %166, %167 : vector<8x64xf32>
    %169 = arith.negf %168 : vector<8x64xf32>
    %170 = math.exp %169 : vector<8x64xf32>
    %cst_39 = arith.constant 1.000000e+00 : f32
    %171 = vector.broadcast %cst_39 : f32 to vector<8x64xf32>
    %172 = arith.addf %171, %170 : vector<8x64xf32>
    %173 = arith.divf %171, %172 : vector<8x64xf32>
    %174 = vector.extract_strided_slice %173 {offsets = [0, 0], sizes = [8, 32], strides = [1, 1]} : vector<8x64xf32> to vector<8x32xf32>
    %175 = vector.extract_strided_slice %173 {offsets = [0, 32], sizes = [8, 32], strides = [1, 1]} : vector<8x64xf32> to vector<8x32xf32>
    %176 = vector.extract_strided_slice %164 {offsets = [0, 64], sizes = [8, 32], strides = [1, 1]} : vector<8x96xf32> to vector<8x32xf32>
    %177 = vector.extract_strided_slice %165 {offsets = [0, 64], sizes = [8, 32], strides = [1, 1]} : vector<8x96xf32> to vector<8x32xf32>
    %178 = vector.broadcast %4 : vector<1x32xf32> to vector<8x32xf32>
    %179 = arith.addf %177, %178 : vector<8x32xf32>
    %180 = arith.mulf %174, %179 : vector<8x32xf32>
    %181 = arith.addf %176, %180 : vector<8x32xf32>
    %182 = math.tanh %181 : vector<8x32xf32>
    %cst_40 = arith.constant 1.000000e+00 : f32
    %183 = vector.broadcast %cst_40 : f32 to vector<8x32xf32>
    %184 = arith.subf %183, %175 : vector<8x32xf32>
    %185 = arith.mulf %184, %182 : vector<8x32xf32>
    %186 = arith.mulf %175, %161 : vector<8x32xf32>
    %187 = arith.addf %185, %186 : vector<8x32xf32>
    %c7_i32 = arith.constant 7 : i32
    %188 = arith.index_cast %c7_i32 : i32 to index
    %c0_41 = arith.constant 0 : index
    %c0_42 = arith.constant 0 : index
    %189 = vector.load %arg1[%188, %c0_41, %c0_42] : memref<8x8x96xf32, #tpu.memory_space<vmem>>, vector<1x8x96xf32>
    %190 = vector.shape_cast %189 : vector<1x8x96xf32> to vector<8x96xf32>
    %cst_43 = arith.constant dense<0.000000e+00> : vector<8x96xf32>
    %191 = tpu.matmul %187, %3, %cst_43 {dimension_numbers = #tpu.dot_dimension_numbers<[1], [0], [0], [1], [0, 0, 1, 1], [], []>} : vector<8x32xf32>, vector<32x96xf32>, vector<8x96xf32> -> vector<8x96xf32>
    %192 = vector.extract_strided_slice %190 {offsets = [0, 0], sizes = [8, 64], strides = [1, 1]} : vector<8x96xf32> to vector<8x64xf32>
    %193 = vector.extract_strided_slice %191 {offsets = [0, 0], sizes = [8, 64], strides = [1, 1]} : vector<8x96xf32> to vector<8x64xf32>
    %194 = arith.addf %192, %193 : vector<8x64xf32>
    %195 = arith.negf %194 : vector<8x64xf32>
    %196 = math.exp %195 : vector<8x64xf32>
    %cst_44 = arith.constant 1.000000e+00 : f32
    %197 = vector.broadcast %cst_44 : f32 to vector<8x64xf32>
    %198 = arith.addf %197, %196 : vector<8x64xf32>
    %199 = arith.divf %197, %198 : vector<8x64xf32>
    %200 = vector.extract_strided_slice %199 {offsets = [0, 0], sizes = [8, 32], strides = [1, 1]} : vector<8x64xf32> to vector<8x32xf32>
    %201 = vector.extract_strided_slice %199 {offsets = [0, 32], sizes = [8, 32], strides = [1, 1]} : vector<8x64xf32> to vector<8x32xf32>
    %202 = vector.extract_strided_slice %190 {offsets = [0, 64], sizes = [8, 32], strides = [1, 1]} : vector<8x96xf32> to vector<8x32xf32>
    %203 = vector.extract_strided_slice %191 {offsets = [0, 64], sizes = [8, 32], strides = [1, 1]} : vector<8x96xf32> to vector<8x32xf32>
    %204 = vector.broadcast %4 : vector<1x32xf32> to vector<8x32xf32>
    %205 = arith.addf %203, %204 : vector<8x32xf32>
    %206 = arith.mulf %200, %205 : vector<8x32xf32>
    %207 = arith.addf %202, %206 : vector<8x32xf32>
    %208 = math.tanh %207 : vector<8x32xf32>
    %cst_45 = arith.constant 1.000000e+00 : f32
    %209 = vector.broadcast %cst_45 : f32 to vector<8x32xf32>
    %210 = arith.subf %209, %201 : vector<8x32xf32>
    %211 = arith.mulf %210, %208 : vector<8x32xf32>
    %212 = arith.mulf %201, %187 : vector<8x32xf32>
    %213 = arith.addf %211, %212 : vector<8x32xf32>
    %c8_i32 = arith.constant 8 : i32
    %c0_46 = arith.constant 0 : index
    %c0_47 = arith.constant 0 : index
    %214 = vector.load %arg6[%c0_46, %c0_47] : memref<8x32xf32, #tpu.memory_space<vmem>>, vector<8x32xf32>
    tpu.vector_store %arg6[%c0_46, %c0_47], %213 {strides = array<i32>} : memref<8x32xf32, #tpu.memory_space<vmem>>, vector<8x32xf32>,
    %c0_i32_48 = arith.constant 0 : i32
    %215 = arith.cmpi eq, %arg0, %c0_i32_48 : i32
    %216 = arith.extui %215 : i1 to i32
    %c0_i32_49 = arith.constant 0 : i32
    %217 = arith.cmpi ne, %216, %c0_i32_49 : i32
    scf.if %217 {
      %c0_50 = arith.constant 0 : index
      %c0_51 = arith.constant 0 : index
      %218 = vector.load %arg5[%c0_50, %c0_51] : memref<8x32xf32, #tpu.memory_space<vmem>>, vector<8x32xf32>
      tpu.vector_store %arg5[%c0_50, %c0_51], %213 {strides = array<i32>} : memref<8x32xf32, #tpu.memory_space<vmem>>, vector<8x32xf32>,
    } else {
    }
    return
  }
  func.func @transform_0(%arg0: i32) -> (i32, i32, i32) {
    %c0_i32 = arith.constant 0 : i32
    %c0_i32_0 = arith.constant 0 : i32
    %c0_i32_1 = arith.constant 0 : i32
    return %arg0, %c0_i32, %c0_i32_0 : i32, i32, i32
  }
  func.func @transform_1(%arg0: i32) -> (i32, i32) {
    %c0_i32 = arith.constant 0 : i32
    %c0_i32_0 = arith.constant 0 : i32
    %c0_i32_1 = arith.constant 0 : i32
    return %c0_i32, %c0_i32_0 : i32, i32
  }
  func.func @transform_2(%arg0: i32) -> (i32, i32) {
    %c0_i32 = arith.constant 0 : i32
    %c0_i32_0 = arith.constant 0 : i32
    %c0_i32_1 = arith.constant 0 : i32
    return %c0_i32, %c0_i32_0 : i32, i32
  }
  func.func @transform_3(%arg0: i32) -> (i32, i32) {
    %c0_i32 = arith.constant 0 : i32
    %c0_i32_0 = arith.constant 0 : i32
    %c0_i32_1 = arith.constant 0 : i32
    return %c0_i32, %c0_i32_0 : i32, i32
  }
  func.func @transform_4(%arg0: i32) -> (i32, i32) {
    %c0_i32 = arith.constant 0 : i32
    %c0_i32_0 = arith.constant 0 : i32
    %c0_i32_1 = arith.constant 0 : i32
    return %c0_i32, %c0_i32_0 : i32, i32
  }
}

</mosaic_0001>

<bundles_post_ra>
// kernel: intend_forward.1
= control target key start
LH: loop header
LB: loop body
LE: loop exit
PB: predicated region body
PF: predicated region fallthrough
CT: control target
= control target key end

     0   :  { %v1174_v3 = vmov 0.0|0.0   ;;  %vm1175_vm0 = vmmov 0   ;;  %v1176_v6 = vmov 0.0   ;;  %vm23_vm1 = vcmask 261120   ;;  %s1177_s27 = smov 64   ;;  %s1366_s0 = inlined_call_operand.vmem [shape: f32[8,8,96], index: 0, kind: input, shape index: {}]   ;;  %s1367_s1 = inlined_call_operand.vmem [shape: f32[8,32], index: 1, kind: input, shape index: {}]   ;;  %s1368_s2 = inlined_call_operand.vmem [shape: f32[32,96], index: 2, kind: input, shape index: {}]   ;;  %s1369_s3 = inlined_call_operand.vmem [shape: f32[1,32], index: 3, kind: input, shape index: {}]   ;;  %s1370_s4 = inlined_call_operand.hbm [shape: f32[8,32], index: 4, kind: output, shape index: {}]  }
   0x1   :  { %v25_v0 = vld [vmem:[%s1368_s2] sm:$0xff]  ;;  %v26_v1 = vld [vmem:[%s1368_s2 + $0x8] sm:$0xff]  ;;  %v27_v2 = vld [vmem:[%s1368_s2 + $0x10] sm:$0xff]  ;;  %1047 = vmatprep.subr.bf16.mxu0 %v1174_v3  ;;  %967 = vmatprep.mubr.msk.f32.mxu0 %vm1175_vm0, %v1176_v6 }
   0x2   :  { %v1216_v4 = vpack.c.bf16 %v26_v1, %v25_v0  ;;  %v28_v5 = vld [vmem:[%s1368_s2 + $0x18] sm:$0xff]  ;;  %v22_v7 = vld [vmem:[%s1367_s1] sm:$0xff]  ;;  %1053 = vmatprep.subr.bf16.mxu1 %v1174_v3 }
   0x3   :  { %v897_v8 = vld [vmem:[%s1369_s3] ss:$0 sm:$0xff]  ;;  %24 = vst.msk [vmem:[#allocation2] sm:$0xff] %vm23_vm1, %v22_v7 }
   0x4   :  { %118 = vrot.lane.b32.xlu0 %v897_v8, %s1177_s27 }
   0x5   :  { %9 = vsyncpa [#allocation4], 0  ;;  %1049 = vmatpush3.bf16.msra.mxu0 %v1216_v4  ;;  %v1233_v9 = vpack.c.bf16 %v28_v5, %v27_v2  ;;  %1055 = vmatpush3.bf16.msra.mxu1 %v1216_v4  ;;  %s1178_s1 = smov 32   ;;  %v31_v15 = vld [vmem:[%s1366_s0] sm:$0xff]  ;;  %s1179_s28 = smov 96   ;;  %v898_v36 = vld [vmem:[%s1366_s0 + $0x8] sm:$0xff] }
   0x6   :  { %1050 = vmatprep.subr.bf16.mxu0 %v1174_v3  ;;  %1056 = vmatprep.subr.bf16.mxu1 %v1174_v3  ;;  %v901_v56 = vld [vmem:[%s1366_s0 + $0x10] sm:$0xff] }
   0x7   :  { %978 = vmatprep.mubr.msk.f32.mxu1 %vm1175_vm0, %v1176_v6 }
   0x9   :  { %1052 = vmatpush3.bf16.msra.mxu0 %v1233_v9  ;;  %1058 = vmatpush3.bf16.msra.mxu1 %v1233_v9 }
   0xa   :  { %1059 = vmatprep.subr.bf16.mxu0 %v1174_v3  ;;  %1065 = vmatprep.subr.bf16.mxu1 %v1174_v3  ;;  %v30_v10 = vld [vmem:[#allocation2] sm:$0xff] }
   0xc   :  { %968 = vmatmul.mubr.msk.f32.vlgmr.msra.gmra.mrb[0].mxu0 %vm23_vm1, %v30_v10 }
   0xd   :  { %1061 = vmatpush3.bf16.msra.mxu0 %v1216_v4  ;;  %989 = vmatprep.mubr.msk.f32.mxu0 %vm1175_vm0, %v1176_v6 }
   0xe   :  { %1062 = vmatprep.subr.bf16.mxu0 %v1174_v3 }
  0x11   :  { %1064 = vmatpush3.bf16.msra.mxu0 %v1233_v9 }
  0x12   :  { %1071 = vmatprep.subr.bf16.mxu0 %v1174_v3 }
  0x76   :  { %v1251_v11 = vpop.permute.xlu0 %118 }
  0xdf   :  { %v102_v12 = vpop.f32.mrb[0].mxu0 }
  0xe0   :  { %v121_v13 = vadd.f32 %v1251_v11, %v102_v12  ;;  %v969_v14 = vpop.f32.mrb[1].mxu0  ;;  %v106_v16 = vadd.f32 %v102_v12, %v31_v15 }
  0xe2   :  { %123 = vrot.lane.b32.xlu0 %v121_v13, %s1177_s27  ;;  %v896_v17 = vmul.f32 -1.442695, %v106_v16 }
  0xe4   :  { %1102 = vpow2.f32 %v896_v17  ;;  %v904_v17 = vld [vmem:[%s1366_s0 + $0x18] sm:$0xff] }
  0xe6   :  { %139 = vrot.lane.b32.xlu0 %v30_v10, %s1178_s1 }
  0xee   :  { %v1103_v18 = vpop.eup %1102 }
  0xef   :  { %v110_v19 = vadd.f32 1.0, %v1103_v18 }
  0xf1   :  { %1104 = vrcp.f32 %v110_v19 }
  0xfb   :  { %v1105_v20 = vpop.eup %1104 }
  0xfc   :  { %v133_v27 = vsub.f32 1.0, %v1105_v20 }
 0x154   :  { %v124_v21 = vpop.permute.xlu0 %123 }
 0x155   :  { %v126_v22 = vmul.f32 %v1105_v20, %v124_v21 }
 0x157   :  { %128 = vrot.lane.b32.xlu1 %v126_v22, %s1177_s27 }
 0x158   :  { %v140_v26 = vpop.permute.xlu0 %139 }
 0x159   :  { %v142_v29 = vmul.f32 %v1105_v20, %v140_v26 }
 0x1c9   :  { %v129_v23 = vpop.permute.xlu1 %128 }
 0x1ca   :  { %v131_v24 = vadd.f32 %v129_v23, %v31_v15 }
 0x1cc   :  { %1106 = vtanh.f32 %v131_v24 }
 0x1d6   :  { %v1107_v25 = vpop.eup %1106 }
 0x1d7   :  { %135 = vrot.lane.b32.xlu1 %v1107_v25, %s1179_s28 }
 0x249   :  { %v136_v28 = vpop.permute.xlu1 %135 }
 0x24a   :  { %v138_v30 = vmul.f32 %v136_v28, %v133_v27 }
 0x24c   :  { %v143_v31 = vadd.f32 %v142_v29, %v138_v30 }
 0x24e   :  { %147 = vrot.lane.b32.xlu1 %v143_v31, %s1179_s28 }
 0x2c0   :  { %v148_v32 = vpop.permute.xlu1 %147 }
 0x2c1   :  { %979 = vmatmul.mubr.msk.f32.vlgmr.msra.gmra.mrb[0].mxu1 %vm23_vm1, %v148_v32 }
 0x2c2   :  { %1067 = vmatpush3.bf16.msra.mxu1 %v1216_v4  ;;  %1000 = vmatprep.mubr.msk.f32.mxu1 %vm1175_vm0, %v1176_v6 }
 0x2c3   :  { %1068 = vmatprep.subr.bf16.mxu1 %v1174_v3 }
 0x2c6   :  { %1070 = vmatpush3.bf16.msra.mxu1 %v1233_v9 }
 0x2c7   :  { %1077 = vmatprep.subr.bf16.mxu1 %v1174_v3 }
 0x394   :  { %v217_v33 = vpop.f32.mrb[0].mxu1 }
 0x395   :  { %v228_v34 = vadd.f32 %v217_v33, %v1251_v11  ;;  %v980_v35 = vpop.f32.mrb[1].mxu1  ;;  %v221_v37 = vadd.f32 %v898_v36, %v217_v33 }
 0x397   :  { %230 = vrot.lane.b32.xlu0 %v228_v34, %s1177_s27  ;;  %v900_v38 = vmul.f32 -1.442695, %v221_v37  ;;  %v907_v37 = vld [vmem:[%s1366_s0 + $0x20] sm:$0xff] }
 0x399   :  { %1108 = vpow2.f32 %v900_v38 }
 0x3a3   :  { %v1109_v39 = vpop.eup %1108 }
 0x3a4   :  { %v225_v40 = vadd.f32 1.0, %v1109_v39 }
 0x3a6   :  { %1110 = vrcp.f32 %v225_v40 }
 0x3b0   :  { %v1111_v41 = vpop.eup %1110 }
 0x3b1   :  { %v240_v47 = vsub.f32 1.0, %v1111_v41  ;;  %v246_v49 = vmul.f32 %v1111_v41, %v143_v31 }
 0x409   :  { %v231_v42 = vpop.permute.xlu0 %230 }
 0x40a   :  { %v233_v43 = vmul.f32 %v1111_v41, %v231_v42 }
 0x40c   :  { %235 = vrot.lane.b32.xlu1 %v233_v43, %s1177_s27 }
 0x47e   :  { %v236_v44 = vpop.permute.xlu1 %235 }
 0x47f   :  { %v238_v45 = vadd.f32 %v898_v36, %v236_v44 }
 0x481   :  { %1112 = vtanh.f32 %v238_v45 }
 0x48b   :  { %v1113_v46 = vpop.eup %1112 }
 0x48c   :  { %242 = vrot.lane.b32.xlu0 %v1113_v46, %s1179_s28 }
 0x4fe   :  { %v243_v48 = vpop.permute.xlu0 %242 }
 0x4ff   :  { %v245_v50 = vmul.f32 %v243_v48, %v240_v47 }
 0x501   :  { %v247_v51 = vadd.f32 %v246_v49, %v245_v50 }
 0x503   :  { %251 = vrot.lane.b32.xlu1 %v247_v51, %s1179_s28 }
 0x575   :  { %v252_v52 = vpop.permute.xlu1 %251 }
 0x576   :  { %990 = vmatmul.mubr.msk.f32.vlgmr.msra.gmra.mrb[2].mxu0 %vm23_vm1, %v252_v52 }
 0x577   :  { %1073 = vmatpush3.bf16.msra.mxu0 %v1216_v4  ;;  %1011 = vmatprep.mubr.msk.f32.mxu0 %vm1175_vm0, %v1176_v6 }
 0x578   :  { %1074 = vmatprep.subr.bf16.mxu0 %v1174_v3 }
 0x57b   :  { %1076 = vmatpush3.bf16.msra.mxu0 %v1233_v9 }
 0x57c   :  { %1083 = vmatprep.subr.bf16.mxu0 %v1174_v3 }
 0x649   :  { %v321_v53 = vpop.f32.mrb[2].mxu0 }
 0x64a   :  { %v332_v54 = vadd.f32 %v321_v53, %v1251_v11  ;;  %v991_v55 = vpop.f32.mrb[3].mxu0  ;;  %v325_v57 = vadd.f32 %v901_v56, %v321_v53 }
 0x64c   :  { %334 = vrot.lane.b32.xlu0 %v332_v54, %s1177_s27  ;;  %v903_v58 = vmul.f32 -1.442695, %v325_v57  ;;  %v910_v57 = vld [vmem:[%s1366_s0 + $0x28] sm:$0xff] }
 0x64e   :  { %1114 = vpow2.f32 %v903_v58 }
 0x658   :  { %v1115_v59 = vpop.eup %1114 }
 0x659   :  { %v329_v60 = vadd.f32 1.0, %v1115_v59 }
 0x65b   :  { %1116 = vrcp.f32 %v329_v60 }
 0x665   :  { %v1117_v61 = vpop.eup %1116 }
 0x666   :  { %v344_v5 = vsub.f32 1.0, %v1117_v61  ;;  %v350_v8 = vmul.f32 %v1117_v61, %v247_v51 }
 0x6be   :  { %v335_v62 = vpop.permute.xlu0 %334 }
 0x6bf   :  { %v337_v63 = vmul.f32 %v1117_v61, %v335_v62 }
 0x6c1   :  { %339 = vrot.lane.b32.xlu1 %v337_v63, %s1177_s27 }
 0x733   :  { %v340_v0 = vpop.permute.xlu1 %339 }
 0x734   :  { %v342_v1 = vadd.f32 %v901_v56, %v340_v0 }
 0x736   :  { %1118 = vtanh.f32 %v342_v1 }
 0x740   :  { %v1119_v2 = vpop.eup %1118 }
 0x741   :  { %346 = vrot.lane.b32.xlu0 %v1119_v2, %s1179_s28 }
 0x7b3   :  { %v347_v7 = vpop.permute.xlu0 %346 }
 0x7b4   :  { %v349_v10 = vmul.f32 %v347_v7, %v344_v5 }
 0x7b6   :  { %v351_v12 = vadd.f32 %v350_v8, %v349_v10 }
 0x7b8   :  { %355 = vrot.lane.b32.xlu1 %v351_v12, %s1179_s28 }
 0x82a   :  { %v356_v13 = vpop.permute.xlu1 %355 }
 0x82b   :  { %1001 = vmatmul.mubr.msk.f32.vlgmr.msra.gmra.mrb[2].mxu1 %vm23_vm1, %v356_v13 }
 0x82c   :  { %1079 = vmatpush3.bf16.msra.mxu1 %v1216_v4  ;;  %1022 = vmatprep.mubr.msk.f32.mxu1 %vm1175_vm0, %v1176_v6 }
 0x82d   :  { %1080 = vmatprep.subr.bf16.mxu1 %v1174_v3 }
 0x830   :  { %1082 = vmatpush3.bf16.msra.mxu1 %v1233_v9 }
 0x831   :  { %1089 = vmatprep.subr.bf16.mxu1 %v1174_v3 }
 0x8fe   :  { %v425_v14 = vpop.f32.mrb[2].mxu1 }
 0x8ff   :  { %v436_v15 = vadd.f32 %v425_v14, %v1251_v11  ;;  %v1002_v16 = vpop.f32.mrb[3].mxu1  ;;  %v429_v18 = vadd.f32 %v904_v17, %v425_v14  ;;  %v913_v14 = vld [vmem:[%s1366_s0 + $0x30] sm:$0xff] }
 0x901   :  { %438 = vrot.lane.b32.xlu0 %v436_v15, %s1177_s27  ;;  %v906_v19 = vmul.f32 -1.442695, %v429_v18 }
 0x903   :  { %1120 = vpow2.f32 %v906_v19 }
 0x90d   :  { %v1121_v20 = vpop.eup %1120 }
 0x90e   :  { %v433_v21 = vadd.f32 1.0, %v1121_v20 }
 0x910   :  { %1122 = vrcp.f32 %v433_v21 }
 0x91a   :  { %v1123_v22 = vpop.eup %1122 }
 0x91b   :  { %v448_v28 = vsub.f32 1.0, %v1123_v22  ;;  %v454_v30 = vmul.f32 %v1123_v22, %v351_v12 }
 0x973   :  { %v439_v23 = vpop.permute.xlu0 %438 }
 0x974   :  { %v441_v24 = vmul.f32 %v1123_v22, %v439_v23 }
 0x976   :  { %443 = vrot.lane.b32.xlu1 %v441_v24, %s1177_s27 }
 0x9e8   :  { %v444_v25 = vpop.permute.xlu1 %443 }
 0x9e9   :  { %v446_v26 = vadd.f32 %v904_v17, %v444_v25 }
 0x9eb   :  { %1124 = vtanh.f32 %v446_v26 }
 0x9f5   :  { %v1125_v27 = vpop.eup %1124 }
 0x9f6   :  { %450 = vrot.lane.b32.xlu0 %v1125_v27, %s1179_s28 }
 0xa68   :  { %v451_v29 = vpop.permute.xlu0 %450 }
 0xa69   :  { %v453_v31 = vmul.f32 %v451_v29, %v448_v28 }
 0xa6b   :  { %v455_v32 = vadd.f32 %v454_v30, %v453_v31 }
 0xa6d   :  { %459 = vrot.lane.b32.xlu1 %v455_v32, %s1179_s28 }
 0xadf   :  { %v460_v33 = vpop.permute.xlu1 %459 }
 0xae0   :  { %1012 = vmatmul.mubr.msk.f32.vlgmr.msra.gmra.mrb[4].mxu0 %vm23_vm1, %v460_v33 }
 0xae1   :  { %1085 = vmatpush3.bf16.msra.mxu0 %v1216_v4  ;;  %1033 = vmatprep.mubr.msk.f32.mxu0 %vm1175_vm0, %v1176_v6 }
 0xae2   :  { %1086 = vmatprep.subr.bf16.mxu0 %v1174_v3 }
 0xae5   :  { %1088 = vmatpush3.bf16.msra.mxu0 %v1233_v9 }
 0xbb3   :  { %v529_v34 = vpop.f32.mrb[4].mxu0 }
 0xbb4   :  { %v540_v35 = vadd.f32 %v529_v34, %v1251_v11  ;;  %v1013_v36 = vpop.f32.mrb[5].mxu0  ;;  %v533_v38 = vadd.f32 %v907_v37, %v529_v34  ;;  %v916_v34 = vld [vmem:[%s1366_s0 + $0x38] sm:$0xff]  ;;  %s1180_s0 = smov [#allocation3]  }
 0xbb5   :  { %s887_s17 = sshll.u32 %s1180_s0, 4  ;;  %s888_s17 = int_to_ptr.vmem [resolvable:$true] %s887_s17 }
 0xbb6   :  { %542 = vrot.lane.b32.xlu0 %v540_v35, %s1177_s27  ;;  %v909_v39 = vmul.f32 -1.442695, %v533_v38  ;;  %s1150_s18 = scalar_lea.vmem %s888_s17, 128  ;;  %p1155_p1 = scmp.lt.s32.totalorder %s888_s17, %s888_s17 }
 0xbb7   :  { %p1151_p0 = scmp.ne.s32.totalorder %s888_s17, %s1150_s18  ;;  %p1156_p2 = scmp.lt.s32.totalorder %s1150_s18, %s1150_s18 }
 0xbb8   :  { %1126 = vpow2.f32 %v909_v39 }
 0xbb9   :  { %p1157_p3 = por %p1156_p2, %p1155_p1 }
 0xbbb   :  { %p1158_p4 = pnand %p1157_p3, %p1151_p0 }
 0xbc2   :  { %v1127_v40 = vpop.eup %1126 }
 0xbc3   :  { %v537_v41 = vadd.f32 1.0, %v1127_v40 }
 0xbc5   :  { %1128 = vrcp.f32 %v537_v41 }
 0xbcf   :  { %v1129_v42 = vpop.eup %1128 }
 0xbd0   :  { %v552_v48 = vsub.f32 1.0, %v1129_v42  ;;  %v558_v50 = vmul.f32 %v1129_v42, %v455_v32 }
 0xc28   :  { %v543_v43 = vpop.permute.xlu0 %542 }
 0xc29   :  { %v545_v44 = vmul.f32 %v1129_v42, %v543_v43 }
 0xc2b   :  { %547 = vrot.lane.b32.xlu1 %v545_v44, %s1177_s27 }
 0xc9d   :  { %v548_v45 = vpop.permute.xlu1 %547 }
 0xc9e   :  { %v550_v46 = vadd.f32 %v907_v37, %v548_v45 }
 0xca0   :  { %1130 = vtanh.f32 %v550_v46 }
 0xcaa   :  { %v1131_v47 = vpop.eup %1130 }
 0xcab   :  { %554 = vrot.lane.b32.xlu0 %v1131_v47, %s1179_s28 }
 0xd1d   :  { %v555_v49 = vpop.permute.xlu0 %554 }
 0xd1e   :  { %v557_v51 = vmul.f32 %v555_v49, %v552_v48 }
 0xd20   :  { %v559_v52 = vadd.f32 %v558_v50, %v557_v51 }
 0xd22   :  { %563 = vrot.lane.b32.xlu1 %v559_v52, %s1179_s28 }
 0xd94   :  { %v564_v53 = vpop.permute.xlu1 %563 }
 0xd95   :  { %1023 = vmatmul.mubr.msk.f32.vlgmr.msra.gmra.mrb[4].mxu1 %vm23_vm1, %v564_v53 }
 0xd96   :  { %1091 = vmatpush3.bf16.msra.mxu1 %v1216_v4  ;;  %1044 = vmatprep.mubr.msk.f32.mxu1 %vm1175_vm0, %v1176_v6 }
 0xd97   :  { %1092 = vmatprep.subr.bf16.mxu1 %v1174_v3 }
 0xd9a   :  { %1094 = vmatpush3.bf16.msra.mxu1 %v1233_v9 }
 0xe68   :  { %v633_v54 = vpop.f32.mrb[4].mxu1 }
 0xe69   :  { %v644_v55 = vadd.f32 %v633_v54, %v1251_v11  ;;  %v1024_v56 = vpop.f32.mrb[5].mxu1  ;;  %v637_v58 = vadd.f32 %v910_v57, %v633_v54 }
 0xe6b   :  { %646 = vrot.lane.b32.xlu0 %v644_v55, %s1177_s27  ;;  %v912_v59 = vmul.f32 -1.442695, %v637_v58 }
 0xe6d   :  { %1132 = vpow2.f32 %v912_v59 }
 0xe77   :  { %v1133_v4 = vpop.eup %1132 }
 0xe78   :  { %v641_v60 = vadd.f32 1.0, %v1133_v4 }
 0xe7a   :  { %1134 = vrcp.f32 %v641_v60 }
 0xe84   :  { %v1135_v6 = vpop.eup %1134 }
 0xe85   :  { %v656_v0 = vsub.f32 1.0, %v1135_v6  ;;  %v662_v2 = vmul.f32 %v1135_v6, %v559_v52 }
 0xedd   :  { %v647_v3 = vpop.permute.xlu0 %646 }
 0xede   :  { %v649_v61 = vmul.f32 %v1135_v6, %v647_v3 }
 0xee0   :  { %651 = vrot.lane.b32.xlu1 %v649_v61, %s1177_s27 }
 0xf52   :  { %v652_v9 = vpop.permute.xlu1 %651 }
 0xf53   :  { %v654_v62 = vadd.f32 %v910_v57, %v652_v9 }
 0xf55   :  { %1136 = vtanh.f32 %v654_v62 }
 0xf5f   :  { %v1137_v63 = vpop.eup %1136 }
 0xf60   :  { %658 = vrot.lane.b32.xlu0 %v1137_v63, %s1179_s28 }
 0xfd2   :  { %v659_v1 = vpop.permute.xlu0 %658 }
 0xfd3   :  { %v661_v5 = vmul.f32 %v659_v1, %v656_v0 }
 0xfd5   :  { %v663_v7 = vadd.f32 %v662_v2, %v661_v5 }
 0xfd7   :  { %667 = vrot.lane.b32.xlu1 %v663_v7, %s1179_s28 }
0x1049   :  { %v668_v8 = vpop.permute.xlu1 %667 }
0x104a   :  { %1034 = vmatmul.mubr.msk.f32.vlgmr.msra.gmra.mrb[6].mxu0 %vm23_vm1, %v668_v8 }
0x111d   :  { %v737_v10 = vpop.f32.mrb[6].mxu0 }
0x111e   :  { %v748_v12 = vadd.f32 %v737_v10, %v1251_v11  ;;  %v1035_v13 = vpop.f32.mrb[7].mxu0  ;;  %v741_v15 = vadd.f32 %v913_v14, %v737_v10 }
0x1120   :  { %750 = vrot.lane.b32.xlu0 %v748_v12, %s1177_s27  ;;  %v915_v16 = vmul.f32 -1.442695, %v741_v15 }
0x1122   :  { %1138 = vpow2.f32 %v915_v16 }
0x112c   :  { %v1139_v17 = vpop.eup %1138 }
0x112d   :  { %v745_v18 = vadd.f32 1.0, %v1139_v17 }
0x112f   :  { %1140 = vrcp.f32 %v745_v18 }
0x1139   :  { %v1141_v19 = vpop.eup %1140 }
0x113a   :  { %v760_v25 = vsub.f32 1.0, %v1141_v19  ;;  %v766_v27 = vmul.f32 %v1141_v19, %v663_v7 }
0x1192   :  { %v751_v20 = vpop.permute.xlu0 %750 }
0x1193   :  { %v753_v21 = vmul.f32 %v1141_v19, %v751_v20 }
0x1195   :  { %755 = vrot.lane.b32.xlu1 %v753_v21, %s1177_s27 }
0x1207   :  { %v756_v22 = vpop.permute.xlu1 %755 }
0x1208   :  { %v758_v23 = vadd.f32 %v913_v14, %v756_v22 }
0x120a   :  { %1142 = vtanh.f32 %v758_v23 }
0x1214   :  { %v1143_v24 = vpop.eup %1142 }
0x1215   :  { %762 = vrot.lane.b32.xlu0 %v1143_v24, %s1179_s28 }
0x1287   :  { %v763_v26 = vpop.permute.xlu0 %762 }
0x1288   :  { %v765_v28 = vmul.f32 %v763_v26, %v760_v25 }
0x128a   :  { %v767_v29 = vadd.f32 %v766_v27, %v765_v28 }
0x128c   :  { %771 = vrot.lane.b32.xlu1 %v767_v29, %s1179_s28 }
0x12fe   :  { %v772_v30 = vpop.permute.xlu1 %771 }
0x12ff   :  { %1045 = vmatmul.mubr.msk.f32.vlgmr.msra.gmra.mrb[6].mxu1 %vm23_vm1, %v772_v30 }
0x13d2   :  { %v841_v31 = vpop.f32.mrb[6].mxu1 }
0x13d3   :  { %v852_v32 = vadd.f32 %v841_v31, %v1251_v11  ;;  %v1046_v33 = vpop.f32.mrb[7].mxu1  ;;  %v845_v35 = vadd.f32 %v916_v34, %v841_v31 }
0x13d5   :  { %854 = vrot.lane.b32.xlu0 %v852_v32, %s1177_s27  ;;  %v918_v36 = vmul.f32 -1.442695, %v845_v35 }
0x13d7   :  { %1144 = vpow2.f32 %v918_v36 }
0x13e1   :  { %v1145_v37 = vpop.eup %1144 }
0x13e2   :  { %v849_v38 = vadd.f32 1.0, %v1145_v37 }
0x13e4   :  { %1146 = vrcp.f32 %v849_v38 }
0x13ee   :  { %v1147_v39 = vpop.eup %1146 }
0x13ef   :  { %v864_v44 = vsub.f32 1.0, %v1147_v39  ;;  %v870_v46 = vmul.f32 %v1147_v39, %v767_v29 }
0x1447   :  { %v855_v40 = vpop.permute.xlu0 %854 }
0x1448   :  { %v857_v41 = vmul.f32 %v1147_v39, %v855_v40 }
0x144a   :  { %859 = vrot.lane.b32.xlu1 %v857_v41, %s1177_s27 }
0x14bc   :  { %v860_v42 = vpop.permute.xlu1 %859 }
0x14bd   :  { %v862_v11 = vadd.f32 %v916_v34, %v860_v42 }
0x14bf   :  { %1148 = vtanh.f32 %v862_v11 }
0x14c9   :  { %v1149_v43 = vpop.eup %1148 }
0x14ca   :  { %866 = vrot.lane.b32.xlu0 %v1149_v43, %s1179_s28 }
0x153c   :  { %v867_v45 = vpop.permute.xlu0 %866 }
0x153d   :  { %v869_v47 = vmul.f32 %v867_v45, %v864_v44 }
0x153f   :  { %v871_v48 = vadd.f32 %v870_v46, %v869_v47 }
0x1541   :  { %873 = vrot.lane.b32.xlu1 %v871_v48, %s1179_s28 }
0x15b3   :  { %v874_v49 = vpop.permute.xlu1 %873 }
0x15b4   :  { %876 = vst.msk [vmem:[#allocation2] sm:$0xff] %vm23_vm1, %v874_v49  ;;  %880 = vst.msk [vmem:[#allocation3] sm:$0xff] %vm23_vm1, %v874_v49 }
0x15b5   :  { %1161 = shalt.err (!%p1158_p4)
}
0x15b6   :  { %s1162_s21 = scalar_lea.hbm %s1370_s4, 128 }
0x15b7   :  { %p1163_p5 = scmp.ne.s32.totalorder %s1370_s4, %s1162_s21  ;;  %p1166_p6 = scmp.lt.u32.totalorder %s1162_s21, %s1370_s4 }
0x15b9   :  { %p1168_p7 = pnand %p1166_p6, %p1163_p5 }
0x15bb   :  { %1171 = shalt.err (!%p1168_p7)
}
0x15bc   :  { %890 = dma.vmem_to_hbm [thread:$0]  %s888_s17, 128, %s1370_s4, [#allocation4]  }
0x15bd   :  { %1172 = dma.done.wait [#allocation4], 128  }
0x15be   :  { %1173 = vsyncadd [#allocation4], 4294967168 }
0x15bf   :  { %894 = vsyncpa [#allocation4], 1 }

</bundles_post_ra>
